<compile_context>
chip_gen: v7x
topology: tpu7x:2x2x1
jax: 0.10.0
libtpu: 0.0.40
codegen_flags: <defaults>
</compile_context>

<pallas_src>
import jax
import jax.numpy as jnp
from jax.experimental import pallas as pl
from jax.experimental.pallas import tpu as pltpu

ALPHA = 0.6
CAT_DIM = 42                      # len(cat_cols)
EMB_DIM = int(CAT_DIM * ALPHA)    # 25
INPUT_SIZE = 130                  # len(feat_cols)
CAT_IN = INPUT_SIZE + EMB_DIM     # 155
HIDDEN = 256
OUTPUT = 5                        # len(resp_cols)
BN_EPS = 1e-5
NEG_SLOPE = 0.01

RAW_IN = INPUT_SIZE + CAT_DIM     # 172 raw (pre-embedding) input columns
K_PAD = 256                       # lane-aligned width of the fused [x | x_cat | 1] input
N_PAD = 128                       # lane-dense padded output width


def _leaky(x):
    # max-based leaky: 2 VPU ops/elem vs 3 for cmp+select+mul.
    return jnp.maximum(x, NEG_SLOPE * x)


def _round_up(n, m):
    return ((n + m - 1) // m) * m


def _tpu_config():
    """(row_cap, vmem_limit_bytes, bf16_epilogue, is_v7x) for the attached TPU."""
    try:
        kind = jax.devices()[0].device_kind.lower()
    except Exception:
        kind = ""
    if "7" in kind:
        # v7x: 64 MiB VMEM / TC, 2 TensorCores -> moderate tile, even grid.
        return 2048, 40 << 20, True, True
    if ("v5" in kind) or ("v6" in kind):
        # 128 MiB physical VMEM: big tile, raise the scoped limit.
        return 4096, 64 << 20, ("v6" in kind), False
    # Unknown generation: conservative settings that fit every chip.
    return 2048, 40 << 20, False, False


# ---------------------------------------------------------------------------
# Kernel: 6 aligned bf16 MXU dots + bias/LeakyReLU epilogues.
# ---------------------------------------------------------------------------
def _make_kernel(bf16_act):
    def kernel(xi_ref,
               w1_ref, w2x_ref, w2h_ref,
               w3a_ref, w34_ref, b3_ref,
               w4b_ref, b4_ref,
               out_ref):
        xi = xi_ref[...]                                   # bf16 [TB, 256]

        def act(acc):                                      # f32 acc -> bf16 activation
            if bf16_act:
                return _leaky(acc.astype(jnp.bfloat16))    # packed bf16 VPU (v6e/v7x)
            return _leaky(acc).astype(jnp.bfloat16)        # f32 VPU (v5e)

        # dense1 (embed + BN0 + BN1 + bias folded into w1 via the xi bias lane)
        h1b = act(jnp.dot(xi, w1_ref[...], preferred_element_type=jnp.float32))

        # dense2(cat([bn0(x,e), h1]))  ==  xi @ w2x + h1 @ w2h   (bias folded into w2x)
        h2b = act(jnp.dot(xi, w2x_ref[...], preferred_element_type=jnp.float32)
                  + jnp.dot(h1b, w2h_ref[...], preferred_element_type=jnp.float32))

        # Single h2 push through a [256, 256+128] RHS covering dense3's h2 half
        # and dense4's h2 half.
        r = jnp.dot(h2b, w34_ref[...], preferred_element_type=jnp.float32)

        # dense3(cat([h1, h2]))
        h3b = act(jnp.dot(h1b, w3a_ref[...], preferred_element_type=jnp.float32)
                  + r[:, :HIDDEN] + b3_ref[...])

        # dense4(cat([h2, h3]))  (output padded 5 -> 128 lanes, unmasked store)
        out = (r[:, HIDDEN:]
               + jnp.dot(h3b, w4b_ref[...], preferred_element_type=jnp.float32)
               + b4_ref[...])
        out_ref[...] = out.astype(out_ref.dtype)

    return kernel


# ---------------------------------------------------------------------------
# Parameter construction (PyTorch shapes, stored [in, out]) and host-side folding.
# ---------------------------------------------------------------------------
def init_params(key):
    ks = jax.random.split(key, 32)
    p = {}

    def lin(k1, k2, din, dout):
        w = jax.random.normal(k1, (din, dout), jnp.float32) * (1.0 / jnp.sqrt(din))
        b = jax.random.normal(k2, (1, dout), jnp.float32) * 0.01
        return w, b

    def bn(k1, k2, k3, k4, d):
        gamma = 1.0 + 0.1 * jax.random.normal(k1, (d,), jnp.float32)
        beta = 0.1 * jax.random.normal(k2, (d,), jnp.float32)
        rmean = 0.1 * jax.random.normal(k3, (d,), jnp.float32)
        rvar = jnp.abs(jax.random.normal(k4, (d,), jnp.float32)) + 0.5
        scale = gamma / jnp.sqrt(rvar + BN_EPS)
        shift = beta - rmean * scale
        return scale.reshape(1, d), shift.reshape(1, d)

    p["we"], p["be"] = lin(ks[0], ks[1], CAT_DIM, EMB_DIM)
    p["s0"], p["t0"] = bn(ks[2], ks[3], ks[4], ks[5], CAT_IN)
    p["w1"], p["b1"] = lin(ks[6], ks[7], CAT_IN, HIDDEN)
    p["s1"], p["t1"] = bn(ks[8], ks[9], ks[10], ks[11], HIDDEN)
    p["w2"], p["b2"] = lin(ks[12], ks[13], CAT_IN + HIDDEN, HIDDEN)
    p["s2"], p["t2"] = bn(ks[14], ks[15], ks[16], ks[17], HIDDEN)
    p["w3"], p["b3"] = lin(ks[18], ks[19], 2 * HIDDEN, HIDDEN)
    p["s3"], p["t3"] = bn(ks[20], ks[21], ks[22], ks[23], HIDDEN)
    p["w4"], p["b4"] = lin(ks[24], ks[25], 2 * HIDDEN, OUTPUT)
    return p


def fold_params(p):
    """Fold BatchNorms + embedding Linear + b1/b2 into the dense weights (one-time)."""
    s0, t0 = p["s0"][0], p["t0"][0]
    s1, t1 = p["s1"][0], p["t1"][0]
    s2, t2 = p["s2"][0], p["t2"][0]
    s3, t3 = p["s3"][0], p["t3"][0]
    we, be = p["we"], p["be"][0]

    # dense1: ((cat([x, e]) * s0 + t0) @ W1 + b1) * s1 + t1
    w1 = (s0[:, None] * p["w1"]) * s1[None, :]
    b1 = (p["b1"][0] + t0 @ p["w1"]) * s1 + t1
    a1, e1 = w1[:INPUT_SIZE], w1[INPUT_SIZE:]
    w1_full = jnp.concatenate([a1, we @ e1], axis=0)            # [172, 256]
    b1 = b1 + be @ e1

    # dense2: first CAT_IN rows see BN0-normalized features, remaining rows see h1
    w2_in = (s0[:, None] * p["w2"][:CAT_IN]) * s2[None, :]
    w2_h = p["w2"][CAT_IN:] * s2[None, :]
    b2 = (p["b2"][0] + t0 @ p["w2"][:CAT_IN]) * s2 + t2
    a2, e2 = w2_in[:INPUT_SIZE], w2_in[INPUT_SIZE:]
    w2_full = jnp.concatenate([a2, we @ e2], axis=0)            # [172, 256]
    b2 = b2 + be @ e2

    # dense3: fold s3/t3 into columns/bias
    w3 = p["w3"] * s3[None, :]
    b3 = p["b3"][0] * s3 + t3

    w4, b4 = p["w4"], p["b4"][0]

    n_tail = K_PAD - RAW_IN - 1     # zero rows after the bias row

    def with_bias_row(w, b):
        # [172, 256] weights + bias row (fed by the constant-1 xi lane) + zero pad.
        return jnp.concatenate(
            [w, b.reshape(1, HIDDEN), jnp.zeros((n_tail, HIDDEN), jnp.float32)],
            axis=0)                                             # -> [256, 256]

    w4a = jnp.pad(w4[:HIDDEN], ((0, 0), (0, N_PAD - OUTPUT)))   # [256, 128]
    w4b = jnp.pad(w4[HIDDEN:], ((0, 0), (0, N_PAD - OUTPUT)))   # [256, 128]
    w34 = jnp.concatenate([w3[HIDDEN:], w4a], axis=1)           # [256, 384]

    return {
        "w1": with_bias_row(w1_full, b1).astype(jnp.bfloat16),
        "w2x": with_bias_row(w2_full, b2).astype(jnp.bfloat16),
        "w2h": w2_h.astype(jnp.bfloat16),
        "w3a": w3[:HIDDEN].astype(jnp.bfloat16),
        "w34": w34.astype(jnp.bfloat16),
        "b3": b3.reshape(1, HIDDEN).astype(jnp.float32),
        "w4b": w4b.astype(jnp.bfloat16),
        "b4": jnp.pad(b4, (0, N_PAD - OUTPUT)).reshape(1, N_PAD).astype(jnp.float32),
    }


# ---------------------------------------------------------------------------
# Wrapper
# ---------------------------------------------------------------------------
def spikenet_forward(x, x_cat, folded, block_rows=None):
    B = x.shape[0]
    row_cap, vmem_limit, bf16_act, is_v7x = _tpu_config()
    if block_rows is not None:
        row_cap = block_rows

    tb = min(row_cap, _round_up(B, 16))
    if is_v7x and B > 16:
        # Prefer an even number (>= 2) of grid steps so both TensorCores get work.
        ntiles = max(2, -(-B // row_cap))
        if ntiles % 2:
            ntiles += 1
        tb = min(tb, _round_up(-(-B // ntiles), 16))
    bp = _round_up(B, tb)

    # Fused lane-aligned input: [x | x_cat | 1 (bias lane) | 0] -> [bp, 256] bf16.
    # TODO(synk): in production build this buffer in the upstream producer (and
    # consume the padded (bp, 128) output slab) to avoid the extra HBM passes.
    ones = jnp.ones((B, 1), x.dtype)
    xi = jnp.concatenate([x, x_cat, ones], axis=1)
    xi = jnp.pad(xi, ((0, bp - B), (0, K_PAD - RAW_IN - 1))).astype(jnp.bfloat16)

    def const(shape):
        return pl.BlockSpec(shape, lambda i: (0,) * len(shape))

    in_specs = [
        pl.BlockSpec((tb, K_PAD), lambda i: (i, 0)),                 # xi
        const((K_PAD, HIDDEN)),                                      # w1  (+bias row)
        const((K_PAD, HIDDEN)), const((HIDDEN, HIDDEN)),             # w2x (+bias row), w2h
        const((HIDDEN, HIDDEN)), const((HIDDEN, HIDDEN + N_PAD)),    # w3a, w34
        const((1, HIDDEN)),                                          # b3
        const((HIDDEN, N_PAD)), const((1, N_PAD)),                   # w4b, b4
    ]
    out_specs = pl.BlockSpec((tb, N_PAD), lambda i: (i, 0))

    macs_per_row = (4 * K_PAD * HIDDEN + HIDDEN * (HIDDEN + N_PAD) + HIDDEN * N_PAD)
    flops = 2 * bp * macs_per_row
    weight_bytes = 2 * macs_per_row
    bytes_accessed = bp * K_PAD * 2 + weight_bytes + bp * N_PAD * 4

    out = pl.pallas_call(
        _make_kernel(bf16_act),
        out_shape=jax.ShapeDtypeStruct((bp, N_PAD), jnp.float32),
        grid=(bp // tb,),
        in_specs=in_specs,
        out_specs=out_specs,
        compiler_params=pltpu.CompilerParams(
            dimension_semantics=("parallel",),
            vmem_limit_bytes=vmem_limit),
        cost_estimate=pl.CostEstimate(
            flops=flops, transcendentals=0, bytes_accessed=bytes_accessed),
    )(xi,
      folded["w1"], folded["w2x"], folded["w2h"],
      folded["w3a"], folded["w34"], folded["b3"],
      folded["w4b"], folded["b4"])

    return out[:B, :OUTPUT]


def spikenet_reference(x, x_cat, p):
    """Pure-JAX f32 reference mirroring the PyTorch forward (explicit concats, eval mode)."""
    e = x_cat @ p["we"] + p["be"]
    h = jnp.concatenate([x, e], axis=1)
    h = h * p["s0"] + p["t0"]
    h1 = _leaky((h @ p["w1"] + p["b1"]) * p["s1"] + p["t1"])
    c = jnp.concatenate([h, h1], axis=1)
    h2 = _leaky((c @ p["w2"] + p["b2"]) * p["s2"] + p["t2"])
    c = jnp.concatenate([h1, h2], axis=1)
    h3 = _leaky((c @ p["w3"] + p["b3"]) * p["s3"] + p["t3"])
    c = jnp.concatenate([h2, h3], axis=1)
    return c @ p["w4"] + p["b4"]


if __name__ == "__main__":
    key = jax.random.PRNGKey(0)
    k_param, k_x, k_xc = jax.random.split(key, 3)
    B = 8
    x = jax.random.normal(k_x, (B, INPUT_SIZE), jnp.float32)
    x_cat = jax.random.normal(k_xc, (B, CAT_DIM), jnp.float32)

    params = init_params(k_param)
    folded = fold_params(params)

    out = spikenet_forward(x, x_cat, folded)
    out = jax.block_until_ready(out)

    ref = spikenet_reference(x, x_cat, params)
    assert out.shape == (B, OUTPUT)
    # bf16 MXU path (weights, biases, activations) -> relaxed tolerance vs f32 reference.
    err = float(jnp.max(jnp.abs(out - ref)))
    scale = float(jnp.maximum(1.0, jnp.max(jnp.abs(ref))))
    assert err / scale < 5e-2, f"mismatch vs JAX reference: rel_err={err / scale:.3e}"
    print("KERNEL_OK")
</pallas_src>

<mosaic_0001>
module attributes {stable_mosaic.version = 11 : i64} {
  func.func @kernel(%arg0: i32, %arg1: memref<16x256xbf16, #tpu.memory_space<vmem>>, %arg2: memref<256x256xbf16, #tpu.memory_space<vmem>>, %arg3: memref<256x256xbf16, #tpu.memory_space<vmem>>, %arg4: memref<256x256xbf16, #tpu.memory_space<vmem>>, %arg5: memref<256x256xbf16, #tpu.memory_space<vmem>>, %arg6: memref<256x384xbf16, #tpu.memory_space<vmem>>, %arg7: memref<1x256xf32, #tpu.memory_space<vmem>>, %arg8: memref<256x128xbf16, #tpu.memory_space<vmem>>, %arg9: memref<1x128xf32, #tpu.memory_space<vmem>>, %arg10: memref<16x128xf32, #tpu.memory_space<vmem>>) attributes {dimension_semantics = [#tpu.dimension_semantics<parallel>], iteration_bounds = array<i64: 1>, scalar_prefetch = 0 : i64, scratch_operands = 0 : i64, tpu.core_type = #tpu.core_type<tc>, window_params = [{transform_indices = @transform_0, window_bounds = array<i64: 16, 256>}, {pipeline_mode = #tpu.pipeline_mode<synchronous>, transform_indices = @transform_1, window_bounds = array<i64: 256, 256>}, {pipeline_mode = #tpu.pipeline_mode<synchronous>, transform_indices = @transform_2, window_bounds = array<i64: 256, 256>}, {pipeline_mode = #tpu.pipeline_mode<synchronous>, transform_indices = @transform_3, window_bounds = array<i64: 256, 256>}, {pipeline_mode = #tpu.pipeline_mode<synchronous>, transform_indices = @transform_4, window_bounds = array<i64: 256, 256>}, {pipeline_mode = #tpu.pipeline_mode<synchronous>, transform_indices = @transform_5, window_bounds = array<i64: 256, 384>}, {pipeline_mode = #tpu.pipeline_mode<synchronous>, transform_indices = @transform_6, window_bounds = array<i64: 1, 256>}, {pipeline_mode = #tpu.pipeline_mode<synchronous>, transform_indices = @transform_7, window_bounds = array<i64: 256, 128>}, {pipeline_mode = #tpu.pipeline_mode<synchronous>, transform_indices = @transform_8, window_bounds = array<i64: 1, 128>}, {transform_indices = @transform_9, window_bounds = array<i64: 16, 128>}]} {
    %c0 = arith.constant 0 : index
    %c0_0 = arith.constant 0 : index
    %0 = vector.load %arg1[%c0, %c0_0] : memref<16x256xbf16, #tpu.memory_space<vmem>>, vector<16x256xbf16>
    %c0_1 = arith.constant 0 : index
    %c0_2 = arith.constant 0 : index
    %1 = vector.load %arg2[%c0_1, %c0_2] : memref<256x256xbf16, #tpu.memory_space<vmem>>, vector<256x256xbf16>
    %cst = arith.constant dense<0.000000e+00> : vector<16x256xf32>
    %2 = tpu.matmul %0, %1, %cst {dimension_numbers = #tpu.dot_dimension_numbers<[1], [0], [0], [1], [0, 0, 1, 1], [], []>} : vector<16x256xbf16>, vector<256x256xbf16>, vector<16x256xf32> -> vector<16x256xf32>
    %cst_3 = arith.constant 0.00999999977 : f32
    %3 = vector.broadcast %cst_3 : f32 to vector<16x256xf32>
    %4 = arith.mulf %3, %2 : vector<16x256xf32>
    %5 = arith.maximumf %2, %4 : vector<16x256xf32>
    %6 = arith.truncf %5 : vector<16x256xf32> to vector<16x256xbf16>
    %c0_4 = arith.constant 0 : index
    %c0_5 = arith.constant 0 : index
    %7 = vector.load %arg3[%c0_4, %c0_5] : memref<256x256xbf16, #tpu.memory_space<vmem>>, vector<256x256xbf16>
    %cst_6 = arith.constant dense<0.000000e+00> : vector<16x256xf32>
    %8 = tpu.matmul %0, %7, %cst_6 {dimension_numbers = #tpu.dot_dimension_numbers<[1], [0], [0], [1], [0, 0, 1, 1], [], []>} : vector<16x256xbf16>, vector<256x256xbf16>, vector<16x256xf32> -> vector<16x256xf32>
    %c0_7 = arith.constant 0 : index
    %c0_8 = arith.constant 0 : index
    %9 = vector.load %arg4[%c0_7, %c0_8] : memref<256x256xbf16, #tpu.memory_space<vmem>>, vector<256x256xbf16>
    %cst_9 = arith.constant dense<0.000000e+00> : vector<16x256xf32>
    %10 = tpu.matmul %6, %9, %cst_9 {dimension_numbers = #tpu.dot_dimension_numbers<[1], [0], [0], [1], [0, 0, 1, 1], [], []>} : vector<16x256xbf16>, vector<256x256xbf16>, vector<16x256xf32> -> vector<16x256xf32>
    %11 = arith.addf %8, %10 : vector<16x256xf32>
    %cst_10 = arith.constant 0.00999999977 : f32
    %12 = vector.broadcast %cst_10 : f32 to vector<16x256xf32>
    %13 = arith.mulf %12, %11 : vector<16x256xf32>
    %14 = arith.maximumf %11, %13 : vector<16x256xf32>
    %15 = arith.truncf %14 : vector<16x256xf32> to vector<16x256xbf16>
    %c0_11 = arith.constant 0 : index
    %c0_12 = arith.constant 0 : index
    %16 = vector.load %arg6[%c0_11, %c0_12] : memref<256x384xbf16, #tpu.memory_space<vmem>>, vector<256x384xbf16>
    %cst_13 = arith.constant dense<0.000000e+00> : vector<16x384xf32>
    %17 = tpu.matmul %15, %16, %cst_13 {dimension_numbers = #tpu.dot_dimension_numbers<[1], [0], [0], [1], [0, 0, 1, 1], [], []>} : vector<16x256xbf16>, vector<256x384xbf16>, vector<16x384xf32> -> vector<16x384xf32>
    %c0_14 = arith.constant 0 : index
    %c0_15 = arith.constant 0 : index
    %18 = vector.load %arg5[%c0_14, %c0_15] : memref<256x256xbf16, #tpu.memory_space<vmem>>, vector<256x256xbf16>
    %cst_16 = arith.constant dense<0.000000e+00> : vector<16x256xf32>
    %19 = tpu.matmul %6, %18, %cst_16 {dimension_numbers = #tpu.dot_dimension_numbers<[1], [0], [0], [1], [0, 0, 1, 1], [], []>} : vector<16x256xbf16>, vector<256x256xbf16>, vector<16x256xf32> -> vector<16x256xf32>
    %20 = vector.extract_strided_slice %17 {offsets = [0, 0], sizes = [16, 256], strides = [1, 1]} : vector<16x384xf32> to vector<16x256xf32>
    %21 = arith.addf %19, %20 : vector<16x256xf32>
    %c0_17 = arith.constant 0 : index
    %c0_18 = arith.constant 0 : index
    %22 = vector.load %arg7[%c0_17, %c0_18] : memref<1x256xf32, #tpu.memory_space<vmem>>, vector<1x256xf32>
    %23 = vector.broadcast %22 : vector<1x256xf32> to vector<16x256xf32>
    %24 = arith.addf %21, %23 : vector<16x256xf32>
    %cst_19 = arith.constant 0.00999999977 : f32
    %25 = vector.broadcast %cst_19 : f32 to vector<16x256xf32>
    %26 = arith.mulf %25, %24 : vector<16x256xf32>
    %27 = arith.maximumf %24, %26 : vector<16x256xf32>
    %28 = arith.truncf %27 : vector<16x256xf32> to vector<16x256xbf16>
    %29 = vector.extract_strided_slice %17 {offsets = [0, 256], sizes = [16, 128], strides = [1, 1]} : vector<16x384xf32> to vector<16x128xf32>
    %c0_20 = arith.constant 0 : index
    %c0_21 = arith.constant 0 : index
    %30 = vector.load %arg8[%c0_20, %c0_21] : memref<256x128xbf16, #tpu.memory_space<vmem>>, vector<256x128xbf16>
    %cst_22 = arith.constant dense<0.000000e+00> : vector<16x128xf32>
    %31 = tpu.matmul %28, %30, %cst_22 {dimension_numbers = #tpu.dot_dimension_numbers<[1], [0], [0], [1], [0, 0, 1, 1], [], []>} : vector<16x256xbf16>, vector<256x128xbf16>, vector<16x128xf32> -> vector<16x128xf32>
    %32 = arith.addf %29, %31 : vector<16x128xf32>
    %c0_23 = arith.constant 0 : index
    %c0_24 = arith.constant 0 : index
    %33 = vector.load %arg9[%c0_23, %c0_24] : memref<1x128xf32, #tpu.memory_space<vmem>>, vector<1x128xf32>
    %34 = vector.broadcast %33 : vector<1x128xf32> to vector<16x128xf32>
    %35 = arith.addf %32, %34 : vector<16x128xf32>
    %c0_25 = arith.constant 0 : index
    %c0_26 = arith.constant 0 : index
    %36 = vector.load %arg10[%c0_25, %c0_26] : memref<16x128xf32, #tpu.memory_space<vmem>>, vector<16x128xf32>
    tpu.vector_store %arg10[%c0_25, %c0_26], %35 {strides = array<i32>} : memref<16x128xf32, #tpu.memory_space<vmem>>, vector<16x128xf32>,
    return
  }
  func.func @transform_0(%arg0: i32) -> (i32, i32) {
    %c0_i32 = arith.constant 0 : i32
    %c0_i32_0 = arith.constant 0 : i32
    return %arg0, %c0_i32 : i32, i32
  }
  func.func @transform_1(%arg0: i32) -> (i32, i32) {
    %c0_i32 = arith.constant 0 : i32
    %c0_i32_0 = arith.constant 0 : i32
    %c0_i32_1 = arith.constant 0 : i32
    return %c0_i32, %c0_i32_0 : i32, i32
  }
  func.func @transform_2(%arg0: i32) -> (i32, i32) {
    %c0_i32 = arith.constant 0 : i32
    %c0_i32_0 = arith.constant 0 : i32
    %c0_i32_1 = arith.constant 0 : i32
    return %c0_i32, %c0_i32_0 : i32, i32
  }
  func.func @transform_3(%arg0: i32) -> (i32, i32) {
    %c0_i32 = arith.constant 0 : i32
    %c0_i32_0 = arith.constant 0 : i32
    %c0_i32_1 = arith.constant 0 : i32
    return %c0_i32, %c0_i32_0 : i32, i32
  }
  func.func @transform_4(%arg0: i32) -> (i32, i32) {
    %c0_i32 = arith.constant 0 : i32
    %c0_i32_0 = arith.constant 0 : i32
    %c0_i32_1 = arith.constant 0 : i32
    return %c0_i32, %c0_i32_0 : i32, i32
  }
  func.func @transform_5(%arg0: i32) -> (i32, i32) {
    %c0_i32 = arith.constant 0 : i32
    %c0_i32_0 = arith.constant 0 : i32
    %c0_i32_1 = arith.constant 0 : i32
    return %c0_i32, %c0_i32_0 : i32, i32
  }
  func.func @transform_6(%arg0: i32) -> (i32, i32) {
    %c0_i32 = arith.constant 0 : i32
    %c0_i32_0 = arith.constant 0 : i32
    %c0_i32_1 = arith.constant 0 : i32
    return %c0_i32, %c0_i32_0 : i32, i32
  }
  func.func @transform_7(%arg0: i32) -> (i32, i32) {
    %c0_i32 = arith.constant 0 : i32
    %c0_i32_0 = arith.constant 0 : i32
    %c0_i32_1 = arith.constant 0 : i32
    return %c0_i32, %c0_i32_0 : i32, i32
  }
  func.func @transform_8(%arg0: i32) -> (i32, i32) {
    %c0_i32 = arith.constant 0 : i32
    %c0_i32_0 = arith.constant 0 : i32
    %c0_i32_1 = arith.constant 0 : i32
    return %c0_i32, %c0_i32_0 : i32, i32
  }
  func.func @transform_9(%arg0: i32) -> (i32, i32) {
    %c0_i32 = arith.constant 0 : i32
    %c0_i32_0 = arith.constant 0 : i32
    return %arg0, %c0_i32 : i32, i32
  }
}

</mosaic_0001>

<bundles_post_ra>
// kernel: tpu_custom_call.1
= control target key start
LH: loop header
LB: loop body
LE: loop exit
PB: predicated region body
PF: predicated region fallthrough
CT: control target
= control target key end

     0   :  { %14 = vsyncpa [#allocation3], 0  ;;  %s2662_s0 = inlined_call_operand.hbm [shape: bf16[16,256], index: 0, kind: input, shape index: {}]   ;;  %s2663_s1 = inlined_call_operand.hbm [shape: bf16[256,256], index: 1, kind: input, shape index: {}]   ;;  %s2664_s2 = inlined_call_operand.hbm [shape: bf16[256,256], index: 2, kind: input, shape index: {}]   ;;  %s2665_s3 = inlined_call_operand.hbm [shape: bf16[256,256], index: 3, kind: input, shape index: {}]   ;;  %s2666_s4 = inlined_call_operand.hbm [shape: bf16[256,256], index: 4, kind: input, shape index: {}]   ;;  %s2667_s5 = inlined_call_operand.hbm [shape: bf16[256,384], index: 5, kind: input, shape index: {}]   ;;  %s2668_s6 = inlined_call_operand.vmem [shape: f32[1,256], index: 6, kind: input, shape index: {}]   ;;  %s2669_s7 = inlined_call_operand.hbm [shape: bf16[256,128], index: 7, kind: input, shape index: {}]   ;;  %s2670_s8 = inlined_call_operand.vmem [shape: f32[1,128], index: 8, kind: input, shape index: {}]   ;;  %s2671_s9 = inlined_call_operand.hbm [shape: f32[16,128], index: 9, kind: output, shape index: {}]  }
   0x1   :  { %15 = vsyncpa [#allocation6], 0 }
   0x2   :  { %16 = vsyncpa [#allocation9], 0 }
   0x3   :  { %17 = vsyncpa [#allocation12], 0 }
   0x4   :  { %18 = vsyncpa [#allocation4], 0  ;;  %s2455_s30 = smov [#allocation5]   ;;  %s2456_s11 = smov [#allocation8]  }
   0x5   :  { %s36_s10 = sshll.u32 %s2455_s30, 4  ;;  %s60_s12 = sshll.u32 %s2456_s11, 4  ;;  %s37_s10 = int_to_ptr.vmem [resolvable:$true] %s36_s10  ;;  %s2519_s12 = int_to_ptr.vmem [resolvable:$true] %s60_s12 }
   0x6   :  { %s2269_s15 = scalar_lea.hbm %s2663_s1, 4096 }
   0x7   :  { %p2270_p0 = scmp.ne.s32.totalorder %s2663_s1, %s2269_s15  ;;  %p2273_p1 = scmp.lt.u32.totalorder %s2269_s15, %s2663_s1 }
   0x9   :  { %p2275_p2 = pnand %p2273_p1, %p2270_p0 }
   0xb   :  { %2278 = shalt.err (!%p2275_p2)
}
   0xc   :  { %s2279_s20 = scalar_lea.vmem %s37_s10, 4096  ;;  %p2284_p4 = scmp.lt.s32.totalorder %s37_s10, %s37_s10 }
   0xd   :  { %p2280_p3 = scmp.ne.s32.totalorder %s37_s10, %s2279_s20  ;;  %p2285_p5 = scmp.lt.s32.totalorder %s2279_s20, %s2279_s20 }
   0xf   :  { %p2286_p6 = por %p2285_p5, %p2284_p4 }
  0x11   :  { %p2287_p7 = pnand %p2286_p6, %p2280_p3 }
  0x13   :  { %2290 = shalt.err (!%p2287_p7)
}
  0x14   :  { %s2457_s21 = smov 128   ;;  %s2458_s22 = smov 8  }
  0x15   :  { %42 = dma.hbm_to_vmem [thread:$0]  %s2663_s1, 4096, %s37_s10, [#allocation6], %s2457_s21, %s2457_s21, %s2458_s22  }
  0x16   :  { %s2291_s27 = scalar_lea.hbm %s2665_s3, 4096 }
  0x17   :  { %p2292_p8 = scmp.ne.s32.totalorder %s2665_s3, %s2291_s27  ;;  %p2295_p9 = scmp.lt.u32.totalorder %s2291_s27, %s2665_s3 }
  0x19   :  { %p2297_p10 = pnand %p2295_p9, %p2292_p8 }
  0x1b   :  { %2300 = shalt.err (!%p2297_p10)
}
  0x1c   :  { %s2301_s13 = scalar_lea.vmem %s2519_s12, 4096  ;;  %p2306_p12 = scmp.lt.s32.totalorder %s2519_s12, %s2519_s12 }
  0x1d   :  { %p2302_p11 = scmp.ne.s32.totalorder %s2519_s12, %s2301_s13  ;;  %p2307_p13 = scmp.lt.s32.totalorder %s2301_s13, %s2301_s13 }
  0x1f   :  { %p2308_p0 = por %p2307_p13, %p2306_p12 }
  0x21   :  { %p2309_p1 = pnand %p2308_p0, %p2302_p11 }
  0x23   :  { %2312 = shalt.err (!%p2309_p1)
}
  0x24   :  { %66 = dma.hbm_to_vmem [thread:$0]  %s2665_s3, 4096, %s2519_s12, [#allocation9], %s2457_s21, %s2457_s21, %s2458_s22  }
  0x25   :  { %s2459_s14 = smov [#allocation11]   ;;  %s2313_s18 = scalar_lea.hbm %s2667_s5, 6144 }
  0x26   :  { %s84_s15 = sshll.u32 %s2459_s14, 4  ;;  %p2314_p2 = scmp.ne.s32.totalorder %s2667_s5, %s2313_s18  ;;  %s85_s15 = int_to_ptr.vmem [resolvable:$true] %s84_s15 }
  0x27   :  { %p2317_p3 = scmp.lt.u32.totalorder %s2313_s18, %s2667_s5 }
  0x29   :  { %p2319_p4 = pnand %p2317_p3, %p2314_p2 }
  0x2b   :  { %2322 = shalt.err (!%p2319_p4)
}
  0x2c   :  { %s2323_s25 = scalar_lea.vmem %s85_s15, 6144  ;;  %p2328_p6 = scmp.lt.s32.totalorder %s85_s15, %s85_s15 }
  0x2d   :  { %p2324_p5 = scmp.ne.s32.totalorder %s85_s15, %s2323_s25  ;;  %p2329_p7 = scmp.lt.s32.totalorder %s2323_s25, %s2323_s25 }
  0x2f   :  { %p2330_p8 = por %p2329_p7, %p2328_p6 }
  0x31   :  { %p2331_p9 = pnand %p2330_p8, %p2324_p5 }
  0x33   :  { %2334 = shalt.err (!%p2331_p9)
}
  0x34   :  { %s2460_s3 = smov 192   ;;  %s2461_s12 = smov 12  }
  0x35   :  { %90 = dma.hbm_to_vmem [thread:$0]  %s2667_s5, 6144, %s85_s15, [#allocation12], %s2460_s3, %s2460_s3, %s2461_s12  }
  0x36   :  { %s2462_s28 = smov [#allocation2]   ;;  %s2463_s30 = smov [#allocation7]  }
  0x37   :  { %s24_s29 = sshll.u32 %s2462_s28, 4  ;;  %s48_s11 = sshll.u32 %s2463_s30, 4  ;;  %s25_s29 = int_to_ptr.vmem [resolvable:$true] %s24_s29  ;;  %s49_s11 = int_to_ptr.vmem [resolvable:$true] %s48_s11 }
  0x38   :  { %s2335_s10 = scalar_lea.hbm %s2662_s0, 256 }
  0x39   :  { %p2336_p10 = scmp.ne.s32.totalorder %s2662_s0, %s2335_s10  ;;  %p2339_p11 = scmp.lt.u32.totalorder %s2335_s10, %s2662_s0 }
  0x3b   :  { %p2341_p12 = pnand %p2339_p11, %p2336_p10 }
  0x3d   :  { %2344 = shalt.err (!%p2341_p12)
}
  0x3e   :  { %s2345_s5 = scalar_lea.vmem %s25_s29, 256  ;;  %p2350_p0 = scmp.lt.s32.totalorder %s25_s29, %s25_s29 }
  0x3f   :  { %p2346_p13 = scmp.ne.s32.totalorder %s25_s29, %s2345_s5  ;;  %p2351_p1 = scmp.lt.s32.totalorder %s2345_s5, %s2345_s5 }
  0x41   :  { %p2352_p2 = por %p2351_p1, %p2350_p0 }
  0x43   :  { %p2353_p3 = pnand %p2352_p2, %p2346_p13 }
  0x45   :  { %2356 = shalt.err (!%p2353_p3)
}
  0x46   :  { %30 = dma.hbm_to_vmem [thread:$0]  %s2662_s0, 256, %s25_s29, [#allocation3], %s2457_s21, %s2457_s21, %s2458_s22  }
  0x47   :  { %s2357_s24 = scalar_lea.hbm %s2664_s2, 4096 }
  0x48   :  { %p2358_p4 = scmp.ne.s32.totalorder %s2664_s2, %s2357_s24  ;;  %p2361_p5 = scmp.lt.u32.totalorder %s2357_s24, %s2664_s2 }
  0x4a   :  { %p2363_p6 = pnand %p2361_p5, %p2358_p4 }
  0x4c   :  { %2366 = shalt.err (!%p2363_p6)
}
  0x4d   :  { %s2367_s27 = scalar_lea.vmem %s49_s11, 4096  ;;  %p2372_p8 = scmp.lt.s32.totalorder %s49_s11, %s49_s11 }
  0x4e   :  { %p2368_p7 = scmp.ne.s32.totalorder %s49_s11, %s2367_s27  ;;  %p2373_p9 = scmp.lt.s32.totalorder %s2367_s27, %s2367_s27 }
  0x50   :  { %p2374_p10 = por %p2373_p9, %p2372_p8 }
  0x52   :  { %p2375_p11 = pnand %p2374_p10, %p2368_p7 }
  0x54   :  { %2378 = shalt.err (!%p2375_p11)
}
  0x55   :  { %54 = dma.hbm_to_vmem [thread:$0]  %s2664_s2, 4096, %s49_s11, [#allocation6], %s2457_s21, %s2457_s21, %s2458_s22  }
  0x56   :  { %s2464_s29 = smov [#allocation10]   ;;  %s2465_s13 = smov [#allocation13]  }
  0x57   :  { %s72_s30 = sshll.u32 %s2464_s29, 4  ;;  %s98_s1 = sshll.u32 %s2465_s13, 4  ;;  %s73_s30 = int_to_ptr.vmem [resolvable:$true] %s72_s30  ;;  %s99_s1 = int_to_ptr.vmem [resolvable:$true] %s98_s1 }
  0x58   :  { %s2379_s16 = scalar_lea.hbm %s2666_s4, 4096 }
  0x59   :  { %p2380_p12 = scmp.ne.s32.totalorder %s2666_s4, %s2379_s16  ;;  %p2383_p13 = scmp.lt.u32.totalorder %s2379_s16, %s2666_s4 }
  0x5b   :  { %p2385_p0 = pnand %p2383_p13, %p2380_p12 }
  0x5d   :  { %2388 = shalt.err (!%p2385_p0)
}
  0x5e   :  { %s2389_s2 = scalar_lea.vmem %s73_s30, 4096  ;;  %p2394_p2 = scmp.lt.s32.totalorder %s73_s30, %s73_s30 }
  0x5f   :  { %p2390_p1 = scmp.ne.s32.totalorder %s73_s30, %s2389_s2  ;;  %p2395_p3 = scmp.lt.s32.totalorder %s2389_s2, %s2389_s2 }
  0x61   :  { %p2396_p4 = por %p2395_p3, %p2394_p2 }
  0x63   :  { %p2397_p5 = pnand %p2396_p4, %p2390_p1 }
  0x65   :  { %2400 = shalt.err (!%p2397_p5)
}
  0x66   :  { %78 = dma.hbm_to_vmem [thread:$0]  %s2666_s4, 4096, %s73_s30, [#allocation9], %s2457_s21, %s2457_s21, %s2458_s22  }
  0x67   :  { %s2401_s24 = scalar_lea.hbm %s2669_s7, 2048 }
  0x68   :  { %p2402_p6 = scmp.ne.s32.totalorder %s2669_s7, %s2401_s24  ;;  %p2405_p7 = scmp.lt.u32.totalorder %s2401_s24, %s2669_s7 }
  0x6a   :  { %p2407_p8 = pnand %p2405_p7, %p2402_p6 }
  0x6c   :  { %2410 = shalt.err (!%p2407_p8)
}
  0x6d   :  { %s2411_s27 = scalar_lea.vmem %s99_s1, 2048  ;;  %p2416_p10 = scmp.lt.s32.totalorder %s99_s1, %s99_s1 }
  0x6e   :  { %p2412_p9 = scmp.ne.s32.totalorder %s99_s1, %s2411_s27  ;;  %p2417_p11 = scmp.lt.s32.totalorder %s2411_s27, %s2411_s27 }
  0x70   :  { %p2418_p12 = por %p2417_p11, %p2416_p10 }
  0x72   :  { %p2419_p13 = pnand %p2418_p12, %p2412_p9 }
  0x74   :  { %2422 = shalt.err (!%p2419_p13)
}
  0x75   :  { %s2466_s4 = smov 64   ;;  %s2467_s0 = smov 4  }
  0x76   :  { %104 = dma.hbm_to_vmem [thread:$0]  %s2669_s7, 2048, %s99_s1, [#allocation12], %s2466_s4, %s2466_s4, %s2467_s0  }
  0x77   :  { %2445 = dma.done.wait [#allocation3], 256  }
  0x78   :  { %2446 = vsyncadd [#allocation3], 4294967040 }
  0x79   :  { %2447 = dma.done.wait [#allocation6], 8192  }
  0x7a   :  { %2448 = vsyncadd [#allocation6], 4294959104 }
  0x7b   :  { %2449 = dma.done.wait [#allocation9], 8192  }
  0x7c   :  { %2450 = vsyncadd [#allocation9], 4294959104 }
  0x7d   :  { %2451 = dma.done.wait [#allocation12], 8192  }
  0x7e   :  { %2452 = vsyncadd [#allocation12], 4294959104  ;;  %v1994_v0 = vld [vmem:[#allocation5 + $0x4] ss:$8 sps:$4 sm:$0xff]   ;;  %v1996_v1 = vld [vmem:[#allocation5] ss:$8 sps:$4 sm:$0xff]  }
  0x7f   :  { %333 = vmatprep.subr.bf16.mxu0 %v1994_v0  ;;  %v1997_v2 = vld [vmem:[#allocation5 + $0x14] ss:$8 sps:$4 sm:$0xff]   ;;  %v1999_v3 = vld [vmem:[#allocation5 + $0x10] ss:$8 sps:$4 sm:$0xff]   ;;  %v2000_v4 = vld [vmem:[#allocation5 + $0x24] ss:$8 sps:$4 sm:$0xff]  }
  0x80   :  { %334 = vmatpush1.bf16.msra.mxu0 %v1996_v1  ;;  %v2002_v5 = vld [vmem:[#allocation5 + $0x20] ss:$8 sps:$4 sm:$0xff]   ;;  %v2003_v6 = vld [vmem:[#allocation5 + $0x34] ss:$8 sps:$4 sm:$0xff]   ;;  %v2005_v7 = vld [vmem:[#allocation5 + $0x30] ss:$8 sps:$4 sm:$0xff]  }
  0x81   :  { %335 = vmatprep.subr.bf16.mxu0 %v1997_v2  ;;  %v2006_v8 = vld [vmem:[#allocation5 + $0x44] ss:$8 sps:$4 sm:$0xff]   ;;  %v2008_v9 = vld [vmem:[#allocation5 + $0x40] ss:$8 sps:$4 sm:$0xff]   ;;  %v2009_v10 = vld [vmem:[#allocation5 + $0x54] ss:$8 sps:$4 sm:$0xff]  }
  0x82   :  { %v2011_v11 = vld [vmem:[#allocation5 + $0x50] ss:$8 sps:$4 sm:$0xff]   ;;  %v2012_v12 = vld [vmem:[#allocation5 + $0x64] ss:$8 sps:$4 sm:$0xff]   ;;  %v2014_v13 = vld [vmem:[#allocation5 + $0x60] ss:$8 sps:$4 sm:$0xff]  }
  0x83   :  { %v2015_v14 = vld [vmem:[#allocation5 + $0x74] ss:$8 sps:$4 sm:$0xff]   ;;  %v2045_v16 = vld [vmem:[#allocation8 + $0x4] ss:$8 sps:$4 sm:$0xff]   ;;  %v2047_v17 = vld [vmem:[#allocation8] ss:$8 sps:$4 sm:$0xff]  }
  0x84   :  { %336 = vmatpush1.bf16.msra.mxu0 %v1999_v3  ;;  %v2625_v15 = vld [vmem:[#allocation2 + $0x4] ss:$8 sps:$4 sm:$0xff]   ;;  %610 = vmatprep.subr.bf16.mxu1 %v2045_v16  ;;  %v2050_v19 = vld [vmem:[#allocation8 + $0x10] ss:$8 sps:$4 sm:$0xff]   ;;  %v2051_v21 = vld [vmem:[#allocation8 + $0x24] ss:$8 sps:$4 sm:$0xff]  }
  0x85   :  { %337 = vmatprep.subr.bf16.mxu0 %v2000_v4  ;;  %365 = vmatprep.mubr.bf16.mxu0 %v2625_v15  ;;  %v2048_v18 = vld [vmem:[#allocation8 + $0x14] ss:$8 sps:$4 sm:$0xff]   ;;  %v2017_v20 = vld [vmem:[#allocation5 + $0x70] ss:$8 sps:$4 sm:$0xff]   ;;  %v2018_v22 = vld [vmem:[#allocation5 + $0x84] ss:$8 sps:$4 sm:$0xff]  }
  0x86   :  { %611 = vmatpush1.bf16.msra.mxu1 %v2047_v17  ;;  %v2053_v23 = vld [vmem:[#allocation8 + $0x20] ss:$8 sps:$4 sm:$0xff]   ;;  %v2054_v25 = vld [vmem:[#allocation8 + $0x34] ss:$8 sps:$4 sm:$0xff]   ;;  %v2056_v27 = vld [vmem:[#allocation8 + $0x30] ss:$8 sps:$4 sm:$0xff]  }
  0x87   :  { %612 = vmatprep.subr.bf16.mxu1 %v2048_v18  ;;  %v2020_v24 = vld [vmem:[#allocation5 + $0x80] ss:$8 sps:$4 sm:$0xff]   ;;  %v2021_v26 = vld [vmem:[#allocation5 + $0x94] ss:$8 sps:$4 sm:$0xff]   ;;  %v2023_v28 = vld [vmem:[#allocation5 + $0x90] ss:$8 sps:$4 sm:$0xff]  }
  0x88   :  { %338 = vmatpush1.bf16.msra.mxu0 %v2002_v5  ;;  %v2057_v29 = vld [vmem:[#allocation8 + $0x44] ss:$8 sps:$4 sm:$0xff]   ;;  %v2026_v31 = vld [vmem:[#allocation5 + $0xa0] ss:$8 sps:$4 sm:$0xff]   ;;  %v2027_v33 = vld [vmem:[#allocation5 + $0xb4] ss:$8 sps:$4 sm:$0xff]  }
  0x89   :  { %339 = vmatprep.subr.bf16.mxu0 %v2003_v6  ;;  %v2024_v30 = vld [vmem:[#allocation5 + $0xa4] ss:$8 sps:$4 sm:$0xff]   ;;  %v2059_v32 = vld [vmem:[#allocation8 + $0x40] ss:$8 sps:$4 sm:$0xff]   ;;  %v2060_v34 = vld [vmem:[#allocation8 + $0x54] ss:$8 sps:$4 sm:$0xff]  }
  0x8a   :  { %613 = vmatpush1.bf16.msra.mxu1 %v2050_v19  ;;  %v2062_v35 = vld [vmem:[#allocation8 + $0x50] ss:$8 sps:$4 sm:$0xff]   ;;  %v2063_v37 = vld [vmem:[#allocation8 + $0x64] ss:$8 sps:$4 sm:$0xff]   ;;  %v2065_v39 = vld [vmem:[#allocation8 + $0x60] ss:$8 sps:$4 sm:$0xff]  }
  0x8b   :  { %614 = vmatprep.subr.bf16.mxu1 %v2051_v21  ;;  %v2029_v36 = vld [vmem:[#allocation5 + $0xb0] ss:$8 sps:$4 sm:$0xff]   ;;  %v2030_v38 = vld [vmem:[#allocation5 + $0xc4] ss:$8 sps:$4 sm:$0xff]   ;;  %v2032_v40 = vld [vmem:[#allocation5 + $0xc0] ss:$8 sps:$4 sm:$0xff]  }
  0x8c   :  { %340 = vmatpush1.bf16.msra.mxu0 %v2005_v7  ;;  %v2066_v41 = vld [vmem:[#allocation8 + $0x74] ss:$8 sps:$4 sm:$0xff]   ;;  %v2068_v43 = vld [vmem:[#allocation8 + $0x70] ss:$8 sps:$4 sm:$0xff]   ;;  %v2069_v45 = vld [vmem:[#allocation8 + $0x84] ss:$8 sps:$4 sm:$0xff]  }
  0x8d   :  { %341 = vmatprep.subr.bf16.mxu0 %v2006_v8  ;;  %v2033_v42 = vld [vmem:[#allocation5 + $0xd4] ss:$8 sps:$4 sm:$0xff]   ;;  %v2035_v44 = vld [vmem:[#allocation5 + $0xd0] ss:$8 sps:$4 sm:$0xff]   ;;  %v2036_v46 = vld [vmem:[#allocation5 + $0xe4] ss:$8 sps:$4 sm:$0xff]  }
  0x8e   :  { %615 = vmatpush1.bf16.msra.mxu1 %v2053_v23  ;;  %v2071_v47 = vld [vmem:[#allocation8 + $0x80] ss:$8 sps:$4 sm:$0xff]   ;;  %v2072_v49 = vld [vmem:[#allocation8 + $0x94] ss:$8 sps:$4 sm:$0xff]   ;;  %v2074_v51 = vld [vmem:[#allocation8 + $0x90] ss:$8 sps:$4 sm:$0xff]  }
  0x8f   :  { %616 = vmatprep.subr.bf16.mxu1 %v2054_v25  ;;  %v2038_v48 = vld [vmem:[#allocation5 + $0xe0] ss:$8 sps:$4 sm:$0xff]   ;;  %v2039_v50 = vld [vmem:[#allocation5 + $0xf4] ss:$8 sps:$4 sm:$0xff]   ;;  %v2041_v52 = vld [vmem:[#allocation5 + $0xf0] ss:$8 sps:$4 sm:$0xff]  }
  0x90   :  { %342 = vmatpush1.bf16.msra.mxu0 %v2008_v9  ;;  %v2075_v53 = vld [vmem:[#allocation8 + $0xa4] ss:$8 sps:$4 sm:$0xff]   ;;  %v2628_v54 = vld [vmem:[#allocation2] ss:$8 sps:$4 sm:$0xff]   ;;  %v2077_v55 = vld [vmem:[#allocation8 + $0xa0] ss:$8 sps:$4 sm:$0xff]  }
  0x91   :  { %343 = vmatprep.subr.bf16.mxu0 %v2009_v10  ;;  %v2078_v56 = vld [vmem:[#allocation8 + $0xb4] ss:$8 sps:$4 sm:$0xff]   ;;  %v2080_v57 = vld [vmem:[#allocation8 + $0xb0] ss:$8 sps:$4 sm:$0xff]   ;;  %v2081_v58 = vld [vmem:[#allocation8 + $0xc4] ss:$8 sps:$4 sm:$0xff]  }
  0x92   :  { %617 = vmatpush1.bf16.msra.mxu1 %v2056_v27  ;;  %v2083_v59 = vld [vmem:[#allocation8 + $0xc0] ss:$8 sps:$4 sm:$0xff]   ;;  %v2084_v60 = vld [vmem:[#allocation8 + $0xd4] ss:$8 sps:$4 sm:$0xff]   ;;  %v2086_v61 = vld [vmem:[#allocation8 + $0xd0] ss:$8 sps:$4 sm:$0xff]  }
  0x93   :  { %618 = vmatprep.subr.bf16.mxu1 %v2057_v29  ;;  %v2087_v62 = vld [vmem:[#allocation8 + $0xe4] ss:$8 sps:$4 sm:$0xff]   ;;  %v2089_v63 = vld [vmem:[#allocation8 + $0xe0] ss:$8 sps:$4 sm:$0xff]   ;;  %v2090_v0 = vld [vmem:[#allocation8 + $0xf4] ss:$8 sps:$4 sm:$0xff]  }
  0x94   :  { %344 = vmatpush1.bf16.msra.mxu0 %v2011_v11  ;;  %v2092_v1 = vld [vmem:[#allocation8 + $0xf0] ss:$8 sps:$4 sm:$0xff]   ;;  %v2095_v2 = vld [vmem:[#allocation7 + $0x4] ss:$8 sps:$4 sm:$0xff]   ;;  %v2146_v5 = vld [vmem:[#allocation11 + $0x1c] ss:$12 sps:$4 sm:$0xff]  }
  0x95   :  { %345 = vmatprep.subr.bf16.mxu0 %v2012_v12  ;;  %v2141_v3 = vld [vmem:[#allocation11] ss:$12 sps:$4 sm:$0xff]   ;;  %v2143_v4 = vld [vmem:[#allocation11 + $0x4] ss:$12 sps:$4 sm:$0xff]   ;;  %v2150_v10 = vld [vmem:[#allocation11 + $0x48] ss:$12 sps:$4 sm:$0xff]  }
  0x96   :  { %619 = vmatpush1.bf16.msra.mxu1 %v2059_v32  ;;  %v2144_v6 = vld [vmem:[#allocation11 + $0x18] ss:$12 sps:$4 sm:$0xff]   ;;  %v2149_v7 = vld [vmem:[#allocation11 + $0x34] ss:$12 sps:$4 sm:$0xff]   ;;  %v2147_v8 = vld [vmem:[#allocation11 + $0x30] ss:$12 sps:$4 sm:$0xff]  }
  0x97   :  { %620 = vmatprep.subr.bf16.mxu1 %v2060_v34  ;;  %v2152_v9 = vld [vmem:[#allocation11 + $0x4c] ss:$12 sps:$4 sm:$0xff]   ;;  %v2155_v11 = vld [vmem:[#allocation11 + $0x64] ss:$12 sps:$4 sm:$0xff]   ;;  %v2161_v16 = vld [vmem:[#allocation11 + $0x94] ss:$12 sps:$4 sm:$0xff]  }
  0x98   :  { %346 = vmatpush1.bf16.msra.mxu0 %v2014_v13  ;;  %v2153_v12 = vld [vmem:[#allocation11 + $0x60] ss:$12 sps:$4 sm:$0xff]   ;;  %v2158_v13 = vld [vmem:[#allocation11 + $0x7c] ss:$12 sps:$4 sm:$0xff]   ;;  %v2170_v23 = vld [vmem:[#allocation11 + $0xd8] ss:$12 sps:$4 sm:$0xff]  }
  0x99   :  { %347 = vmatprep.subr.bf16.mxu0 %v2015_v14  ;;  %v2156_v14 = vld [vmem:[#allocation11 + $0x78] ss:$12 sps:$4 sm:$0xff]   ;;  %v2159_v17 = vld [vmem:[#allocation11 + $0x90] ss:$12 sps:$4 sm:$0xff]   ;;  %v2162_v19 = vld [vmem:[#allocation11 + $0xa8] ss:$12 sps:$4 sm:$0xff]  }
  0x9a   :  { %621 = vmatpush1.bf16.msra.mxu1 %v2062_v35  ;;  %v2164_v18 = vld [vmem:[#allocation11 + $0xac] ss:$12 sps:$4 sm:$0xff]   ;;  %v2175_v25 = vld [vmem:[#allocation11 + $0xf0] ss:$12 sps:$4 sm:$0xff]   ;;  %v2180_v27 = vld [vmem:[#allocation11 + $0x108] ss:$12 sps:$4 sm:$0xff]  }
  0x9b   :  { %622 = vmatprep.subr.bf16.mxu1 %v2063_v37  ;;  %v2165_v21 = vld [vmem:[#allocation11 + $0xc0] ss:$12 sps:$4 sm:$0xff]   ;;  %s2468_s1 = smov [#allocation14]  }
  0x9c   :  { %348 = vmatpush1.bf16.msra.mxu0 %v2017_v20  ;;  %v2167_v20 = vld [vmem:[#allocation11 + $0xc4] ss:$12 sps:$4 sm:$0xff]   ;;  %v2185_v29 = vld [vmem:[#allocation11 + $0x120] ss:$12 sps:$4 sm:$0xff]   ;;  %s1718_s10 = sshll.u32 %s2468_s1, 4  ;;  %s1719_s10 = int_to_ptr.vmem [resolvable:$true] %s1718_s10 }
  0x9d   :  { %349 = vmatprep.subr.bf16.mxu0 %v2018_v22  ;;  %v2172_v22 = vld [vmem:[#allocation11 + $0xdc] ss:$12 sps:$4 sm:$0xff]   ;;  %s2423_s14 = scalar_lea.vmem %s1719_s10, 256  ;;  %p2428_p1 = scmp.lt.s32.totalorder %s1719_s10, %s1719_s10 }
  0x9e   :  { %623 = vmatpush1.bf16.msra.mxu1 %v2065_v39  ;;  %p2424_p0 = scmp.ne.s32.totalorder %s1719_s10, %s2423_s14  ;;  %p2429_p2 = scmp.lt.s32.totalorder %s2423_s14, %s2423_s14 }
  0x9f   :  { %624 = vmatprep.subr.bf16.mxu1 %v2066_v41 }
  0xa0   :  { %350 = vmatpush1.bf16.msra.mxu0 %v2020_v24  ;;  %v2177_v24 = vld [vmem:[#allocation11 + $0xf4] ss:$12 sps:$4 sm:$0xff]   ;;  %p2430_p3 = por %p2429_p2, %p2428_p1 }
  0xa1   :  { %351 = vmatprep.subr.bf16.mxu0 %v2021_v26  ;;  %v2182_v26 = vld [vmem:[#allocation11 + $0x10c] ss:$12 sps:$4 sm:$0xff]  }
  0xa2   :  { %625 = vmatpush1.bf16.msra.mxu1 %v2068_v43  ;;  %p2431_p4 = pnand %p2430_p3, %p2424_p0 }
  0xa3   :  { %626 = vmatprep.subr.bf16.mxu1 %v2069_v45 }
  0xa4   :  { %352 = vmatpush1.bf16.msra.mxu0 %v2023_v28  ;;  %v2187_v28 = vld [vmem:[#allocation11 + $0x124] ss:$12 sps:$4 sm:$0xff]  }
  0xa5   :  { %353 = vmatprep.subr.bf16.mxu0 %v2024_v30  ;;  %v2192_v30 = vld [vmem:[#allocation11 + $0x13c] ss:$12 sps:$4 sm:$0xff]  }
  0xa6   :  { %627 = vmatpush1.bf16.msra.mxu1 %v2071_v47  ;;  %v2098_v47 = vld [vmem:[#allocation7 + $0x14] ss:$8 sps:$4 sm:$0xff]  }
  0xa7   :  { %628 = vmatprep.subr.bf16.mxu1 %v2072_v49  ;;  %v2101_v49 = vld [vmem:[#allocation7 + $0x24] ss:$8 sps:$4 sm:$0xff]  }
  0xa8   :  { %354 = vmatpush1.bf16.msra.mxu0 %v2026_v31  ;;  %v2190_v31 = vld [vmem:[#allocation11 + $0x138] ss:$12 sps:$4 sm:$0xff]  }
  0xa9   :  { %355 = vmatprep.subr.bf16.mxu0 %v2027_v33 }
  0xaa   :  { %629 = vmatpush1.bf16.msra.mxu1 %v2074_v51  ;;  %v2104_v51 = vld [vmem:[#allocation7 + $0x34] ss:$8 sps:$4 sm:$0xff]  }
  0xab   :  { %630 = vmatprep.subr.bf16.mxu1 %v2075_v53  ;;  %v2107_v53 = vld [vmem:[#allocation7 + $0x44] ss:$8 sps:$4 sm:$0xff]  }
  0xac   :  { %356 = vmatpush1.bf16.msra.mxu0 %v2029_v36 }
  0xad   :  { %357 = vmatprep.subr.bf16.mxu0 %v2030_v38 }
  0xae   :  { %631 = vmatpush1.bf16.msra.mxu1 %v2077_v55  ;;  %v2105_v55 = vld [vmem:[#allocation7 + $0x40] ss:$8 sps:$4 sm:$0xff]  }
  0xaf   :  { %632 = vmatprep.subr.bf16.mxu1 %v2078_v56  ;;  %v2110_v56 = vld [vmem:[#allocation7 + $0x54] ss:$8 sps:$4 sm:$0xff]  }
  0xb0   :  { %358 = vmatpush1.bf16.msra.mxu0 %v2032_v40 }
  0xb1   :  { %359 = vmatprep.subr.bf16.mxu0 %v2033_v42 }
  0xb2   :  { %633 = vmatpush1.bf16.msra.mxu1 %v2080_v57  ;;  %v2108_v57 = vld [vmem:[#allocation7 + $0x50] ss:$8 sps:$4 sm:$0xff]  }
  0xb3   :  { %634 = vmatprep.subr.bf16.mxu1 %v2081_v58  ;;  %v2113_v58 = vld [vmem:[#allocation7 + $0x64] ss:$8 sps:$4 sm:$0xff]  }
  0xb4   :  { %360 = vmatpush1.bf16.msra.mxu0 %v2035_v44 }
  0xb5   :  { %361 = vmatprep.subr.bf16.mxu0 %v2036_v46  ;;  %v2093_v46 = vld [vmem:[#allocation7] ss:$8 sps:$4 sm:$0xff]  }
  0xb6   :  { %635 = vmatpush1.bf16.msra.mxu1 %v2083_v59  ;;  %v2116_v59 = vld [vmem:[#allocation7 + $0x74] ss:$8 sps:$4 sm:$0xff]  }
  0xb7   :  { %636 = vmatprep.subr.bf16.mxu1 %v2084_v60  ;;  %v2114_v60 = vld [vmem:[#allocation7 + $0x70] ss:$8 sps:$4 sm:$0xff]  }
  0xb8   :  { %362 = vmatpush1.bf16.msra.mxu0 %v2038_v48  ;;  %v2096_v48 = vld [vmem:[#allocation7 + $0x10] ss:$8 sps:$4 sm:$0xff]  }
  0xb9   :  { %363 = vmatprep.subr.bf16.mxu0 %v2039_v50  ;;  %v2099_v50 = vld [vmem:[#allocation7 + $0x20] ss:$8 sps:$4 sm:$0xff]  }
  0xba   :  { %637 = vmatpush1.bf16.msra.mxu1 %v2086_v61  ;;  %v2119_v61 = vld [vmem:[#allocation7 + $0x84] ss:$8 sps:$4 sm:$0xff]  }
  0xbb   :  { %638 = vmatprep.subr.bf16.mxu1 %v2087_v62  ;;  %v2117_v62 = vld [vmem:[#allocation7 + $0x80] ss:$8 sps:$4 sm:$0xff]  }
  0xbc   :  { %364 = vmatpush1.bf16.msra.mxu0 %v2041_v52  ;;  %v2102_v52 = vld [vmem:[#allocation7 + $0x30] ss:$8 sps:$4 sm:$0xff]  }
  0xbd   :  { %1186 = vmatprep.subr.bf16.mxu0 %v2143_v4  ;;  %v2126_v4 = vld [vmem:[#allocation7 + $0xb0] ss:$8 sps:$4 sm:$0xff]  }
  0xbe   :  { %639 = vmatpush1.bf16.msra.mxu1 %v2089_v63  ;;  %v2122_v63 = vld [vmem:[#allocation7 + $0x94] ss:$8 sps:$4 sm:$0xff]  }
  0xbf   :  { %366 = vmatmul.mubr.bf16.vlgmr.msra.gmra.mrb[0].mxu0 %v2628_v54  ;;  %640 = vmatprep.subr.bf16.mxu1 %v2090_v0  ;;  %v2120_v0 = vld [vmem:[#allocation7 + $0x90] ss:$8 sps:$4 sm:$0xff]  }
  0xc0   :  { %1187 = vmatpush1.bf16.msra.mxu0 %v2141_v3  ;;  %v2128_v3 = vld [vmem:[#allocation7 + $0xb4] ss:$8 sps:$4 sm:$0xff]  }
  0xc1   :  { %1188 = vmatprep.subr.bf16.mxu0 %v2146_v5  ;;  %v2131_v5 = vld [vmem:[#allocation7 + $0xc4] ss:$8 sps:$4 sm:$0xff]  }
  0xc2   :  { %641 = vmatpush1.bf16.msra.mxu1 %v2092_v1  ;;  %v2125_v1 = vld [vmem:[#allocation7 + $0xa4] ss:$8 sps:$4 sm:$0xff]  }
  0xc3   :  { %813 = vmatprep.subr.bf16.mxu1 %v2095_v2  ;;  %v2123_v2 = vld [vmem:[#allocation7 + $0xa0] ss:$8 sps:$4 sm:$0xff]  }
  0xc4   :  { %1189 = vmatpush1.bf16.msra.mxu0 %v2144_v6  ;;  %v2129_v6 = vld [vmem:[#allocation7 + $0xc0] ss:$8 sps:$4 sm:$0xff]  }
  0xc5   :  { %1190 = vmatprep.subr.bf16.mxu0 %v2149_v7  ;;  %v2134_v7 = vld [vmem:[#allocation7 + $0xd4] ss:$8 sps:$4 sm:$0xff]  }
  0xc8   :  { %1191 = vmatpush1.bf16.msra.mxu0 %v2147_v8  ;;  %v2132_v8 = vld [vmem:[#allocation7 + $0xd0] ss:$8 sps:$4 sm:$0xff]  }
  0xc9   :  { %1192 = vmatprep.subr.bf16.mxu0 %v2152_v9  ;;  %v2137_v9 = vld [vmem:[#allocation7 + $0xe4] ss:$8 sps:$4 sm:$0xff]  }
  0xcc   :  { %1193 = vmatpush1.bf16.msra.mxu0 %v2150_v10  ;;  %v2135_v10 = vld [vmem:[#allocation7 + $0xe0] ss:$8 sps:$4 sm:$0xff]  }
  0xcd   :  { %1194 = vmatprep.subr.bf16.mxu0 %v2155_v11  ;;  %v2140_v11 = vld [vmem:[#allocation7 + $0xf4] ss:$8 sps:$4 sm:$0xff]  }
  0xd0   :  { %1195 = vmatpush1.bf16.msra.mxu0 %v2153_v12  ;;  %v2138_v12 = vld [vmem:[#allocation7 + $0xf0] ss:$8 sps:$4 sm:$0xff]  }
  0xd1   :  { %1196 = vmatprep.subr.bf16.mxu0 %v2158_v13  ;;  %v2168_v13 = vld [vmem:[#allocation11 + $0xc8] ss:$12 sps:$4 sm:$0xff]  }
  0xd4   :  { %1197 = vmatpush1.bf16.msra.mxu0 %v2156_v14  ;;  %v2169_v14 = vld [vmem:[#allocation11 + $0x8] ss:$12 sps:$4 sm:$0xff]  }
  0xd5   :  { %1198 = vmatprep.subr.bf16.mxu0 %v2161_v16  ;;  %v2173_v16 = vld [vmem:[#allocation11 + $0xe0] ss:$12 sps:$4 sm:$0xff]  }
  0xd8   :  { %1199 = vmatpush1.bf16.msra.mxu0 %v2159_v17  ;;  %v2174_v17 = vld [vmem:[#allocation11 + $0x20] ss:$12 sps:$4 sm:$0xff]  }
  0xd9   :  { %1200 = vmatprep.subr.bf16.mxu0 %v2164_v18  ;;  %v2178_v18 = vld [vmem:[#allocation11 + $0xf8] ss:$12 sps:$4 sm:$0xff]  }
  0xdc   :  { %1201 = vmatpush1.bf16.msra.mxu0 %v2162_v19  ;;  %v2179_v19 = vld [vmem:[#allocation11 + $0x38] ss:$12 sps:$4 sm:$0xff]  }
  0xdd   :  { %1202 = vmatprep.subr.bf16.mxu0 %v2167_v20  ;;  %v2183_v20 = vld [vmem:[#allocation11 + $0x110] ss:$12 sps:$4 sm:$0xff]  }
  0xe0   :  { %1203 = vmatpush1.bf16.msra.mxu0 %v2165_v21  ;;  %v2184_v21 = vld [vmem:[#allocation11 + $0x50] ss:$12 sps:$4 sm:$0xff]  }
  0xe1   :  { %1204 = vmatprep.subr.bf16.mxu0 %v2172_v22  ;;  %v2188_v22 = vld [vmem:[#allocation11 + $0x128] ss:$12 sps:$4 sm:$0xff]  }
  0xe4   :  { %1205 = vmatpush1.bf16.msra.mxu0 %v2170_v23  ;;  %v2189_v23 = vld [vmem:[#allocation11 + $0x68] ss:$12 sps:$4 sm:$0xff]  }
  0xe5   :  { %1206 = vmatprep.subr.bf16.mxu0 %v2177_v24  ;;  %v2193_v24 = vld [vmem:[#allocation11 + $0x140] ss:$12 sps:$4 sm:$0xff]  }
  0xe8   :  { %1207 = vmatpush1.bf16.msra.mxu0 %v2175_v25  ;;  %v2194_v25 = vld [vmem:[#allocation11 + $0x80] ss:$12 sps:$4 sm:$0xff]  }
  0xe9   :  { %1208 = vmatprep.subr.bf16.mxu0 %v2182_v26  ;;  %v2195_v26 = vld [vmem:[#allocation11 + $0x150] ss:$12 sps:$4 sm:$0xff]  }
  0xec   :  { %1209 = vmatpush1.bf16.msra.mxu0 %v2180_v27  ;;  %v2198_v27 = vld [vmem:[#allocation11 + $0x158] ss:$12 sps:$4 sm:$0xff]  }
  0xed   :  { %1210 = vmatprep.subr.bf16.mxu0 %v2187_v28  ;;  %v2199_v28 = vld [vmem:[#allocation11 + $0x98] ss:$12 sps:$4 sm:$0xff]  }
  0xf0   :  { %1211 = vmatpush1.bf16.msra.mxu0 %v2185_v29  ;;  %v2202_v29 = vld [vmem:[#allocation11 + $0x16c] ss:$12 sps:$4 sm:$0xff]  }
  0xf1   :  { %1212 = vmatprep.subr.bf16.mxu0 %v2192_v30  ;;  %v2200_v30 = vld [vmem:[#allocation11 + $0x168] ss:$12 sps:$4 sm:$0xff]  }
  0xf4   :  { %1213 = vmatpush1.bf16.msra.mxu0 %v2190_v31  ;;  %v2203_v31 = vld [vmem:[#allocation11 + $0x170] ss:$12 sps:$4 sm:$0xff]  }
 0x192   :  { %v367_v32 = vpop.f32.mrb[0].mxu0 }
 0x193   :  { %v376_v33 = vmul.f32 0.01, %v367_v32  ;;  %v369_v34 = vpop.f32.mrb[1].mxu0 }
 0x194   :  { %v377_v35 = vmul.f32 0.01, %v369_v34  ;;  %v371_v36 = vpop.f32.mrb[2].mxu0 }
 0x195   :  { %v378_v37 = vmul.f32 0.01, %v371_v36  ;;  %v373_v38 = vpop.f32.mrb[3].mxu0  ;;  %v380_v40 = vmax.f32 %v367_v32, %v376_v33  ;;  %v2204_v32 = vld [vmem:[#allocation11 + $0xb0] ss:$12 sps:$4 sm:$0xff]  }
 0x196   :  { %v379_v39 = vmul.f32 0.01, %v373_v38  ;;  %v381_v42 = vmax.f32 %v369_v34, %v377_v35  ;;  %v2207_v33 = vld [vmem:[#allocation10 + $0x4] ss:$8 sps:$4 sm:$0xff]  }
 0x197   :  { %v382_v41 = vmax.f32 %v371_v36, %v378_v37 }
 0x198   :  { %v383_v43 = vmax.f32 %v373_v38, %v379_v39 }
 0x199   :  { %v2631_v44 = vpack.c.bf16 %v382_v41, %v380_v40 }
 0x19a   :  { %v2633_v45 = vpack.c.bf16 %v383_v43, %v381_v42 }
 0x19c   :  { %642 = vmatprep.mubr.bf16.mxu1 %v2633_v45 }
 0x19d   :  { %643 = vmatmul.mubr.bf16.vlgmr.msra.gmra.mrb[0].mxu1 %v2631_v44 }
 0x19e   :  { %814 = vmatpush1.bf16.msra.mxu1 %v2093_v46  ;;  %845 = vmatprep.mubr.bf16.mxu1 %v2625_v15  ;;  %v2111_v15 = vld [vmem:[#allocation7 + $0x60] ss:$8 sps:$4 sm:$0xff]  }
 0x19f   :  { %815 = vmatprep.subr.bf16.mxu1 %v2098_v47 }
 0x1a2   :  { %816 = vmatpush1.bf16.msra.mxu1 %v2096_v48 }
 0x1a3   :  { %817 = vmatprep.subr.bf16.mxu1 %v2101_v49 }
 0x1a6   :  { %818 = vmatpush1.bf16.msra.mxu1 %v2099_v50  ;;  %v2205_v50 = vld [vmem:[#allocation10] ss:$8 sps:$4 sm:$0xff]  }
 0x1a7   :  { %819 = vmatprep.subr.bf16.mxu1 %v2104_v51  ;;  %v2210_v51 = vld [vmem:[#allocation10 + $0x14] ss:$8 sps:$4 sm:$0xff]  }
 0x1aa   :  { %820 = vmatpush1.bf16.msra.mxu1 %v2102_v52  ;;  %v2208_v52 = vld [vmem:[#allocation10 + $0x10] ss:$8 sps:$4 sm:$0xff]  }
 0x1ab   :  { %821 = vmatprep.subr.bf16.mxu1 %v2107_v53  ;;  %v2213_v53 = vld [vmem:[#allocation10 + $0x24] ss:$8 sps:$4 sm:$0xff]  }
 0x1ae   :  { %822 = vmatpush1.bf16.msra.mxu1 %v2105_v55  ;;  %v2211_v55 = vld [vmem:[#allocation10 + $0x20] ss:$8 sps:$4 sm:$0xff]  }
 0x1af   :  { %823 = vmatprep.subr.bf16.mxu1 %v2110_v56  ;;  %v2216_v56 = vld [vmem:[#allocation10 + $0x34] ss:$8 sps:$4 sm:$0xff]  }
 0x1b2   :  { %824 = vmatpush1.bf16.msra.mxu1 %v2108_v57  ;;  %v2214_v57 = vld [vmem:[#allocation10 + $0x30] ss:$8 sps:$4 sm:$0xff]  }
 0x1b3   :  { %825 = vmatprep.subr.bf16.mxu1 %v2113_v58  ;;  %v2219_v58 = vld [vmem:[#allocation10 + $0x44] ss:$8 sps:$4 sm:$0xff]  }
 0x1b6   :  { %826 = vmatpush1.bf16.msra.mxu1 %v2111_v15  ;;  %v2217_v15 = vld [vmem:[#allocation10 + $0x40] ss:$8 sps:$4 sm:$0xff]  }
 0x1b7   :  { %827 = vmatprep.subr.bf16.mxu1 %v2116_v59  ;;  %v2222_v59 = vld [vmem:[#allocation10 + $0x54] ss:$8 sps:$4 sm:$0xff]  }
 0x1ba   :  { %828 = vmatpush1.bf16.msra.mxu1 %v2114_v60  ;;  %v2220_v60 = vld [vmem:[#allocation10 + $0x50] ss:$8 sps:$4 sm:$0xff]  }
 0x1bb   :  { %829 = vmatprep.subr.bf16.mxu1 %v2119_v61  ;;  %v2225_v61 = vld [vmem:[#allocation10 + $0x64] ss:$8 sps:$4 sm:$0xff]  }
 0x1be   :  { %830 = vmatpush1.bf16.msra.mxu1 %v2117_v62  ;;  %v2228_v62 = vld [vmem:[#allocation10 + $0x74] ss:$8 sps:$4 sm:$0xff]  }
 0x1bf   :  { %831 = vmatprep.subr.bf16.mxu1 %v2122_v63  ;;  %v2226_v63 = vld [vmem:[#allocation10 + $0x70] ss:$8 sps:$4 sm:$0xff]  }
 0x1c2   :  { %832 = vmatpush1.bf16.msra.mxu1 %v2120_v0  ;;  %v2231_v0 = vld [vmem:[#allocation10 + $0x84] ss:$8 sps:$4 sm:$0xff]  }
 0x1c3   :  { %833 = vmatprep.subr.bf16.mxu1 %v2125_v1  ;;  %v2229_v1 = vld [vmem:[#allocation10 + $0x80] ss:$8 sps:$4 sm:$0xff]  }
 0x1c6   :  { %834 = vmatpush1.bf16.msra.mxu1 %v2123_v2  ;;  %v2234_v2 = vld [vmem:[#allocation10 + $0x94] ss:$8 sps:$4 sm:$0xff]  }
 0x1c7   :  { %835 = vmatprep.subr.bf16.mxu1 %v2128_v3  ;;  %v2232_v3 = vld [vmem:[#allocation10 + $0x90] ss:$8 sps:$4 sm:$0xff]  }
 0x1ca   :  { %836 = vmatpush1.bf16.msra.mxu1 %v2126_v4  ;;  %v2237_v4 = vld [vmem:[#allocation10 + $0xa4] ss:$8 sps:$4 sm:$0xff]  }
 0x1cb   :  { %837 = vmatprep.subr.bf16.mxu1 %v2131_v5  ;;  %v2235_v5 = vld [vmem:[#allocation10 + $0xa0] ss:$8 sps:$4 sm:$0xff]  }
 0x1ce   :  { %838 = vmatpush1.bf16.msra.mxu1 %v2129_v6  ;;  %v2240_v6 = vld [vmem:[#allocation10 + $0xb4] ss:$8 sps:$4 sm:$0xff]  }
 0x1cf   :  { %839 = vmatprep.subr.bf16.mxu1 %v2134_v7  ;;  %v2238_v7 = vld [vmem:[#allocation10 + $0xb0] ss:$8 sps:$4 sm:$0xff]  }
 0x1d2   :  { %840 = vmatpush1.bf16.msra.mxu1 %v2132_v8  ;;  %v2243_v8 = vld [vmem:[#allocation10 + $0xc4] ss:$8 sps:$4 sm:$0xff]  }
 0x1d3   :  { %841 = vmatprep.subr.bf16.mxu1 %v2137_v9  ;;  %v2241_v9 = vld [vmem:[#allocation10 + $0xc0] ss:$8 sps:$4 sm:$0xff]  }
 0x1d6   :  { %842 = vmatpush1.bf16.msra.mxu1 %v2135_v10  ;;  %v2246_v10 = vld [vmem:[#allocation10 + $0xd4] ss:$8 sps:$4 sm:$0xff]  }
 0x1d7   :  { %843 = vmatprep.subr.bf16.mxu1 %v2140_v11  ;;  %v2244_v11 = vld [vmem:[#allocation10 + $0xd0] ss:$8 sps:$4 sm:$0xff]  }
 0x1da   :  { %844 = vmatpush1.bf16.msra.mxu1 %v2138_v12  ;;  %v2249_v12 = vld [vmem:[#allocation10 + $0xe4] ss:$8 sps:$4 sm:$0xff]  }
 0x1db   :  { %1928 = vmatprep.subr.bf16.mxu1 %v2168_v13  ;;  %v2247_v13 = vld [vmem:[#allocation10 + $0xe0] ss:$8 sps:$4 sm:$0xff]  }
 0x1dd   :  { %846 = vmatmul.mubr.bf16.vlgmr.msra.gmra.mrb[0].mxu1 %v2628_v54  ;;  %v2197_v54 = vld [vmem:[#allocation11 + $0x154] ss:$12 sps:$4 sm:$0xff]  }
 0x1de   :  { %1929 = vmatpush3.bf16.msra.mxu1 %v2169_v14  ;;  %1214 = vmatprep.subr.bf16.mxu0 %v2197_v54  ;;  %v2252_v14 = vld [vmem:[#allocation10 + $0xf4] ss:$8 sps:$4 sm:$0xff]   ;;  %v2262_v54 = vld [vmem:[#allocation13 + $0x20] sm:$0xff]  }
 0x1df   :  { %1930 = vmatprep.subr.bf16.mxu1 %v2173_v16  ;;  %1215 = vmatpush1.bf16.msra.mxu0 %v2195_v26  ;;  %v2250_v16 = vld [vmem:[#allocation10 + $0xf0] ss:$8 sps:$4 sm:$0xff]   ;;  %v2264_v26 = vld [vmem:[#allocation13 + $0x28] sm:$0xff]  }
 0x1e0   :  { %1216 = vmatprep.subr.bf16.mxu0 %v2202_v29  ;;  %v2267_v29 = vld [vmem:[#allocation13 + $0x78] sm:$0xff]  }
 0x1e2   :  { %1931 = vmatpush3.bf16.msra.mxu1 %v2174_v17  ;;  %v2253_v17 = vld [vmem:[#allocation13 + $0x40] sm:$0xff]  }
 0x1e3   :  { %1932 = vmatprep.subr.bf16.mxu1 %v2178_v18  ;;  %1217 = vmatpush1.bf16.msra.mxu0 %v2200_v30  ;;  %v2254_v18 = vld [vmem:[#allocation13] sm:$0xff]   ;;  %v2268_v30 = vld [vmem:[#allocation13 + $0x38] sm:$0xff]  }
 0x1e4   :  { %1462 = vmatprep.subr.bf16.mxu0 %v2207_v33 }
 0x1e6   :  { %1933 = vmatpush3.bf16.msra.mxu1 %v2179_v19  ;;  %v2255_v19 = vld [vmem:[#allocation13 + $0x48] sm:$0xff]  }
 0x1e7   :  { %1934 = vmatprep.subr.bf16.mxu1 %v2183_v20  ;;  %v2256_v20 = vld [vmem:[#allocation13 + $0x8] sm:$0xff]  }
 0x1ea   :  { %1935 = vmatpush3.bf16.msra.mxu1 %v2184_v21  ;;  %v2257_v21 = vld [vmem:[#allocation13 + $0x50] sm:$0xff]  }
 0x1eb   :  { %1936 = vmatprep.subr.bf16.mxu1 %v2188_v22  ;;  %v2258_v22 = vld [vmem:[#allocation13 + $0x10] sm:$0xff]  }
 0x1ee   :  { %1937 = vmatpush3.bf16.msra.mxu1 %v2189_v23  ;;  %v2259_v23 = vld [vmem:[#allocation13 + $0x58] sm:$0xff]  }
 0x1ef   :  { %1938 = vmatprep.subr.bf16.mxu1 %v2193_v24  ;;  %v2260_v24 = vld [vmem:[#allocation13 + $0x18] sm:$0xff]  }
 0x1f2   :  { %1939 = vmatpush3.bf16.msra.mxu1 %v2194_v25  ;;  %v2261_v25 = vld [vmem:[#allocation13 + $0x60] sm:$0xff]  }
 0x1f3   :  { %1940 = vmatprep.subr.bf16.mxu1 %v2198_v27  ;;  %v2265_v27 = vld [vmem:[#allocation13 + $0x70] sm:$0xff]  }
 0x1f6   :  { %1941 = vmatpush3.bf16.msra.mxu1 %v2199_v28  ;;  %v2266_v28 = vld [vmem:[#allocation13 + $0x30] sm:$0xff]  }
 0x1f7   :  { %1942 = vmatprep.subr.bf16.mxu1 %v2203_v31 }
 0x1fa   :  { %1943 = vmatpush3.bf16.msra.mxu1 %v2204_v32 }
 0x1fb   :  { %1950 = vmatprep.subr.bf16.mxu1 %v2253_v17 }
 0x2b0   :  { %v847_v34 = vpop.f32.mrb[0].mxu1 }
 0x2b1   :  { %v856_v35 = vmul.f32 0.01, %v847_v34  ;;  %v849_v36 = vpop.f32.mrb[1].mxu1 }
 0x2b2   :  { %v857_v37 = vmul.f32 0.01, %v849_v36  ;;  %v851_v38 = vpop.f32.mrb[2].mxu1 }
 0x2b3   :  { %v858_v39 = vmul.f32 0.01, %v851_v38  ;;  %v853_v40 = vpop.f32.mrb[3].mxu1  ;;  %v860_v42 = vmax.f32 %v847_v34, %v856_v35 }
 0x2b4   :  { %v859_v41 = vmul.f32 0.01, %v853_v40  ;;  %v861_v46 = vmax.f32 %v849_v36, %v857_v37  ;;  %v1507_v37 = vlaneseq }
 0x2b5   :  { %v862_v43 = vmax.f32 %v851_v38, %v858_v39 }
 0x2b6   :  { %v863_v47 = vmax.f32 %v853_v40, %v859_v41  ;;  %v1508_v38 = vshrl.u32 %v1507_v37, 7  ;;  %v1505_v40 = vld [vmem:[%s2668_s6] sm:$0x3] }
 0x2b7   :  { %v864_v48 = vpack.c.bf16 %v862_v43, %v860_v42 }
 0x2b8   :  { %v865_v49 = vpack.c.bf16 %v863_v47, %v861_v46  ;;  %v1509_v39 = vsub.s32 0, %v1508_v38  ;;  %v1513_v41 = vsub.s32 1, %v1508_v38 }
 0x2ba   :  { %1218 = vmatprep.mubr.bf16.mxu0 %v865_v49  ;;  %1261 = vmatprep.mubr.bf16.mxu1 %v865_v49  ;;  %v1510_v42 = vrot.slane %v1505_v40, %v1509_v39  ;;  %v1514_v43 = vrot.slane %v1505_v40, %v1513_v41 }
 0x2bb   :  { %1219 = vmatmul.mubr.bf16.vlgmr.msra.gmra.mrb[4].mxu0 %v864_v48  ;;  %1262 = vmatmul.mubr.bf16.vlgmr.msra.gmra.mrb[4].mxu1 %v864_v48 }
 0x2bc   :  { %1463 = vmatpush1.bf16.msra.mxu0 %v2205_v50  ;;  %1494 = vmatprep.mubr.bf16.mxu0 %v2633_v45  ;;  %v2223_v45 = vld [vmem:[#allocation10 + $0x60] ss:$8 sps:$4 sm:$0xff]  }
 0x2bd   :  { %1464 = vmatprep.subr.bf16.mxu0 %v2210_v51  ;;  %1951 = vmatpush3.bf16.msra.mxu1 %v2254_v18 }
 0x2be   :  { %1952 = vmatprep.subr.bf16.mxu1 %v2255_v19 }
 0x2c0   :  { %1465 = vmatpush1.bf16.msra.mxu0 %v2208_v52 }
 0x2c1   :  { %1466 = vmatprep.subr.bf16.mxu0 %v2213_v53  ;;  %1953 = vmatpush3.bf16.msra.mxu1 %v2256_v20 }
 0x2c2   :  { %1954 = vmatprep.subr.bf16.mxu1 %v2257_v21 }
 0x2c4   :  { %1467 = vmatpush1.bf16.msra.mxu0 %v2211_v55 }
 0x2c5   :  { %1468 = vmatprep.subr.bf16.mxu0 %v2216_v56  ;;  %1955 = vmatpush3.bf16.msra.mxu1 %v2258_v22 }
 0x2c6   :  { %1956 = vmatprep.subr.bf16.mxu1 %v2259_v23 }
 0x2c8   :  { %1469 = vmatpush1.bf16.msra.mxu0 %v2214_v57 }
 0x2c9   :  { %1470 = vmatprep.subr.bf16.mxu0 %v2219_v58  ;;  %1957 = vmatpush3.bf16.msra.mxu1 %v2260_v24 }
 0x2ca   :  { %1958 = vmatprep.subr.bf16.mxu1 %v2261_v25 }
 0x2cc   :  { %1471 = vmatpush1.bf16.msra.mxu0 %v2217_v15 }
 0x2cd   :  { %1472 = vmatprep.subr.bf16.mxu0 %v2222_v59  ;;  %1959 = vmatpush3.bf16.msra.mxu1 %v2262_v54 }
 0x2d0   :  { %1473 = vmatpush1.bf16.msra.mxu0 %v2220_v60 }
 0x2d1   :  { %1474 = vmatprep.subr.bf16.mxu0 %v2225_v61 }
 0x2d4   :  { %1475 = vmatpush1.bf16.msra.mxu0 %v2223_v45 }
 0x2d5   :  { %1476 = vmatprep.subr.bf16.mxu0 %v2228_v62 }
 0x2d8   :  { %1477 = vmatpush1.bf16.msra.mxu0 %v2226_v63 }
 0x2d9   :  { %1478 = vmatprep.subr.bf16.mxu0 %v2231_v0 }
 0x2dc   :  { %1479 = vmatpush1.bf16.msra.mxu0 %v2229_v1 }
 0x2dd   :  { %1480 = vmatprep.subr.bf16.mxu0 %v2234_v2 }
 0x2e0   :  { %1481 = vmatpush1.bf16.msra.mxu0 %v2232_v3  ;;  %v1927_v3 = vld [vmem:[%s2670_s8] ss:$0 sm:$0xff] }
 0x2e1   :  { %1482 = vmatprep.subr.bf16.mxu0 %v2237_v4 }
 0x2e4   :  { %1483 = vmatpush1.bf16.msra.mxu0 %v2235_v5 }
 0x2e5   :  { %1484 = vmatprep.subr.bf16.mxu0 %v2240_v6 }
 0x2e8   :  { %1485 = vmatpush1.bf16.msra.mxu0 %v2238_v7 }
 0x2e9   :  { %1486 = vmatprep.subr.bf16.mxu0 %v2243_v8 }
 0x2ec   :  { %1487 = vmatpush1.bf16.msra.mxu0 %v2241_v9 }
 0x2ed   :  { %1488 = vmatprep.subr.bf16.mxu0 %v2246_v10 }
 0x2f0   :  { %1489 = vmatpush1.bf16.msra.mxu0 %v2244_v11 }
 0x2f1   :  { %1490 = vmatprep.subr.bf16.mxu0 %v2249_v12 }
 0x2f4   :  { %1491 = vmatpush1.bf16.msra.mxu0 %v2247_v13 }
 0x2f5   :  { %1492 = vmatprep.subr.bf16.mxu0 %v2252_v14 }
 0x2f8   :  { %1493 = vmatpush1.bf16.msra.mxu0 %v2250_v16 }
 0x2fb   :  { %1495 = vmatmul.mubr.bf16.vlgmr.msra.gmra.mrb[4].mxu0 %v2631_v44  ;;  %v2263_v44 = vld [vmem:[#allocation13 + $0x68] sm:$0xff]  }
 0x2fc   :  { %1960 = vmatprep.subr.bf16.mxu1 %v2263_v44 }
 0x2fd   :  { %1961 = vmatpush3.bf16.msra.mxu1 %v2264_v26 }
 0x2fe   :  { %1962 = vmatprep.subr.bf16.mxu1 %v2265_v27 }
 0x301   :  { %1963 = vmatpush3.bf16.msra.mxu1 %v2266_v28 }
 0x302   :  { %1964 = vmatprep.subr.bf16.mxu1 %v2267_v29 }
 0x305   :  { %1965 = vmatpush3.bf16.msra.mxu1 %v2268_v30 }
 0x38e   :  { %v1944_v31 = vpop.f32.mrb[4].mxu1 }
 0x38f   :  { %v1945_v32 = vpop.f32.mrb[5].mxu1 }
 0x390   :  { %v1946_v33 = vadd.f32 %v1945_v32, %v1944_v31  ;;  %v1947_v34 = vpop.f32.mrb[6].mxu1 }
 0x391   :  { %v1948_v35 = vpop.f32.mrb[7].mxu1 }
 0x392   :  { %v1949_v36 = vadd.f32 %v1948_v35, %v1947_v34 }
 0x3ce   :  { %v1496_v46 = vpop.f32.mrb[4].mxu0 }
 0x3cf   :  { %v1517_v47 = vadd.f32 %v1510_v42, %v1496_v46  ;;  %v1498_v48 = vpop.f32.mrb[5].mxu0 }
 0x3d0   :  { %v1518_v49 = vadd.f32 %v1514_v43, %v1498_v48  ;;  %v1500_v50 = vpop.f32.mrb[6].mxu0 }
 0x3d1   :  { %v1521_v51 = vmul.f32 0.01, %v1517_v47  ;;  %v1519_v52 = vadd.f32 %v1510_v42, %v1500_v50  ;;  %v1502_v53 = vpop.f32.mrb[7].mxu0 }
 0x3d2   :  { %v1522_v55 = vmul.f32 0.01, %v1518_v49  ;;  %v1520_v56 = vadd.f32 %v1514_v43, %v1502_v53 }
 0x3d3   :  { %v1523_v57 = vmul.f32 0.01, %v1519_v52  ;;  %v1525_v15 = vmax.f32 %v1517_v47, %v1521_v51 }
 0x3d4   :  { %v1524_v58 = vmul.f32 0.01, %v1520_v56  ;;  %v1526_v60 = vmax.f32 %v1518_v49, %v1522_v55 }
 0x3d5   :  { %v1527_v59 = vmax.f32 %v1519_v52, %v1523_v57 }
 0x3d6   :  { %v1528_v61 = vmax.f32 %v1520_v56, %v1524_v58 }
 0x3d7   :  { %v1529_v45 = vpack.c.bf16 %v1527_v59, %v1525_v15 }
 0x3d8   :  { %v1530_v62 = vpack.c.bf16 %v1528_v61, %v1526_v60 }
 0x3da   :  { %1691 = vmatprep.mubr.bf16.mxu1 %v1530_v62 }
 0x3db   :  { %1692 = vmatmul.mubr.bf16.vlgmr.msra.gmra.mrb[8].mxu1 %v1529_v45 }
 0x4ae   :  { %v1966_v63 = vpop.f32.mrb[8].mxu1 }
 0x4af   :  { %v1967_v0 = vpop.f32.mrb[9].mxu1 }
 0x4b0   :  { %v1968_v1 = vadd.f32 %v1967_v0, %v1966_v63  ;;  %v1969_v2 = vpop.f32.mrb[10].mxu1 }
 0x4b1   :  { %v1970_v4 = vpop.f32.mrb[11].mxu1 }
 0x4b2   :  { %v1700_v5 = vadd.f32 %v1968_v1, %v1946_v33  ;;  %v1971_v6 = vadd.f32 %v1970_v4, %v1969_v2 }
 0x4b4   :  { %v1709_v7 = vadd.f32 %v1927_v3, %v1700_v5  ;;  %v1701_v8 = vadd.f32 %v1971_v6, %v1949_v36 }
 0x4b6   :  { %1711 = vst [vmem:[#allocation14] sm:$0xff] %v1709_v7  ;;  %v1710_v9 = vadd.f32 %v1927_v3, %v1701_v8 }
 0x4b8   :  { %1712 = vst [vmem:[#allocation14 + $0x8] sm:$0xff] %v1710_v9 }
 0x4b9   :  { %2434 = shalt.err (!%p2431_p4)
}
 0x4ba   :  { %s2435_s17 = scalar_lea.hbm %s2671_s9, 256 }
 0x4bb   :  { %p2436_p5 = scmp.ne.s32.totalorder %s2671_s9, %s2435_s17  ;;  %p2439_p6 = scmp.lt.u32.totalorder %s2435_s17, %s2671_s9 }
 0x4bd   :  { %p2441_p7 = pnand %p2439_p6, %p2436_p5 }
 0x4bf   :  { %2444 = shalt.err (!%p2441_p7)
}
 0x4c0   :  { %1724 = dma.vmem_to_hbm [thread:$0]  %s1719_s10, 256, %s2671_s9, [#allocation4], %s2457_s21, %s2457_s21, %s2458_s22  }
 0x4c1   :  { %2453 = dma.done.wait [#allocation4], 256  }
 0x4c2   :  { %2454 = vsyncadd [#allocation4], 4294967040 }
 0x4c3   :  { %1728 = vsyncpa [#allocation3], 1 }
 0x4c4   :  { %1729 = vsyncpa [#allocation6], 1 }
 0x4c5   :  { %1730 = vsyncpa [#allocation9], 1 }
 0x4c6   :  { %1731 = vsyncpa [#allocation12], 1 }
 0x4c7   :  { %1732 = vsyncpa [#allocation4], 1 }

</bundles_post_ra>
